<compile_context>
chip_gen: v7x
topology: tpu7x:2x2x1
jax: 0.10.0
libtpu: 0.0.40
codegen_flags: <defaults>
</compile_context>

<pallas_src>
import jax
import jax.numpy as jnp
from jax import lax
from jax.experimental import pallas as pl
from jax.experimental.pallas import tpu as pltpu


def _fused_mlp_kernel(x_ref, w1_ref, b1_ref, w2_ref, b2_ref, o_ref):
    # x_ref:  (tt, D_in) f32    frame tile of one batch element
    # w1_ref: (H, D_in)  bf16   projection weight (PyTorch layout), resident
    # b1_ref: (H, 1)     f32
    # w2_ref: (C, H)     bf16   output-layer weight (PyTorch layout), resident
    # b2_ref: (C, 1)     f32
    # o_ref:  (C, tt)    f32    lane-dense output block -> (B, C, T) directly
    x = x_ref[...].astype(jnp.bfloat16)              # in-kernel cast, no host pass
    # (H, D_in) . (tt, D_in) contracting D_in -> (H, tt): transposed orientation.
    h = lax.dot_general(
        w1_ref[...], x,
        dimension_numbers=(((1,), (1,)), ((), ())),
        preferred_element_type=jnp.float32)
    h = jnp.maximum(h + b1_ref[...], 0.0)            # bias + ReLU (f32 epilogue)
    # Dropout(0.3) is identity in eval mode.
    h = h.astype(jnp.bfloat16)                       # bf16 for the second MXU pass
    # (C, H) . (H, tt) -> (C, tt): stays lane-dense along T, no hidden transpose.
    out = jnp.dot(w2_ref[...], h, preferred_element_type=jnp.float32)
    o_ref[...] = (out + b2_ref[...]).astype(o_ref.dtype)


def _round_up(x, m):
    return ((x + m - 1) // m) * m


def event_detector_fc_forward(x, w1, b1, w2, b2, *, tt=2048):
    """EventDetector 'fc' branch. x: [B, T, D_in] f32 -> logits [B, C, T] f32."""
    B, T, D_in = x.shape
    H = w1.shape[0]           # 256
    C = w2.shape[0]           # num_classes

    # Tile along T.  tt == T (full-dim block) is always legal under the (8,128)
    # rule; otherwise keep tt a multiple of 128 (lane/MXU friendly on all three
    # generations) and let Pallas mask the ragged final block.
    if T <= tt:
        tt = T
    else:
        tt = max(128, (tt // 128) * 128)
    # v7x has 2 TensorCores: keep the grid at >= 2 steps when possible.
    if B * (-(-T // tt)) == 1 and T >= 256:
        tt = _round_up((T + 1) // 2, 128)
    n_t = -(-T // tt)  # cdiv

    # bf16 weights (tiny, one-time cast), f32 biases for the epilogue.
    w1b = w1.astype(jnp.bfloat16)                    # (H, D_in)
    w2b = w2.astype(jnp.bfloat16)                    # (C, H)
    b1r = b1.reshape(H, 1).astype(jnp.float32)
    b2r = b2.reshape(C, 1).astype(jnp.float32)

    return pl.pallas_call(
        _fused_mlp_kernel,
        out_shape=jax.ShapeDtypeStruct((B, C, T), jnp.float32),
        grid_spec=pltpu.PrefetchScalarGridSpec(
            num_scalar_prefetch=0,
            grid=(B, n_t),
            in_specs=[
                pl.BlockSpec((None, tt, D_in), lambda b, i: (b, i, 0)),  # x tile
                pl.BlockSpec((H, D_in), lambda b, i: (0, 0)),            # W1 resident
                pl.BlockSpec((H, 1), lambda b, i: (0, 0)),               # b1
                pl.BlockSpec((C, H), lambda b, i: (0, 0)),               # W2 resident
                pl.BlockSpec((C, 1), lambda b, i: (0, 0)),               # b2
            ],
            out_specs=pl.BlockSpec((None, C, tt), lambda b, i: (b, 0, i)),
        ),
        compiler_params=pltpu.CompilerParams(
            dimension_semantics=("parallel", "parallel"),
        ),
    )(x, w1b, b1r, w2b, b2r)


def _init_linear(key, out_dim, in_dim):
    # Deterministic init mimicking nn.Linear default (uniform +/- 1/sqrt(in)).
    kw, kb = jax.random.split(key)
    bound = 1.0 / (in_dim ** 0.5)
    w = jax.random.uniform(kw, (out_dim, in_dim), jnp.float32, -bound, bound)
    b = jax.random.uniform(kb, (out_dim,), jnp.float32, -bound, bound)
    return w, b


def _reference_forward(x, w1, b1, w2, b2):
    h = jnp.maximum(jnp.einsum('btd,hd->bth', x, w1) + b1, 0.0)
    logits = jnp.einsum('bth,ch->btc', h, w2) + b2
    return jnp.transpose(logits, (0, 2, 1))


if __name__ == "__main__":
    # Config implied by the module: feature_type='mfcc' -> input_dim=40,
    # architecture='fc' -> 40 -> 256 -> len(config['classes']).
    B, T, D_IN, HID = 2, 16, 40, 256
    NUM_CLASSES = 8  # len(config['classes'])

    key = jax.random.PRNGKey(0)
    kx, k1, k2 = jax.random.split(key, 3)

    x = jax.random.normal(kx, (B, T, D_IN), jnp.float32)
    w1, b1 = _init_linear(k1, HID, D_IN)          # self.projection
    w2, b2 = _init_linear(k2, NUM_CLASSES, HID)   # self.output_layer

    out = event_detector_fc_forward(x, w1, b1, w2, b2)
    out = jax.block_until_ready(out)
    ref = _reference_forward(x, w1, b1, w2, b2)
    assert out.shape == (B, NUM_CLASSES, T), out.shape
    # bf16 weights/activations with f32 accumulation -> loosened tolerance.
    assert jnp.allclose(out, ref, atol=2e-2, rtol=2e-2), float(
        jnp.max(jnp.abs(out - ref)))

    # Ragged-T multi-tile path: T not a multiple of the tile exercises the
    # padded final block (out-of-bounds stores masked by the Pallas pipeline).
    T2 = 200
    x2 = jax.random.normal(jax.random.PRNGKey(1), (B, T2, D_IN), jnp.float32)
    out2 = jax.block_until_ready(
        event_detector_fc_forward(x2, w1, b1, w2, b2, tt=128))
    ref2 = _reference_forward(x2, w1, b1, w2, b2)
    assert out2.shape == (B, NUM_CLASSES, T2), out2.shape
    assert jnp.allclose(out2, ref2, atol=2e-2, rtol=2e-2), float(
        jnp.max(jnp.abs(out2 - ref2)))

    print("KERNEL_OK")
</pallas_src>

<mosaic_0001>
module attributes {stable_mosaic.version = 11 : i64} {
  func.func @_fused_mlp_kernel(%arg0: i32, %arg1: i32, %arg2: memref<1x16x40xf32, #tpu.memory_space<vmem>>, %arg3: memref<256x40xbf16, #tpu.memory_space<vmem>>, %arg4: memref<256x1xf32, #tpu.memory_space<vmem>>, %arg5: memref<8x256xbf16, #tpu.memory_space<vmem>>, %arg6: memref<8x1xf32, #tpu.memory_space<vmem>>, %arg7: memref<1x8x16xf32, #tpu.memory_space<vmem>>) attributes {dimension_semantics = [#tpu.dimension_semantics<parallel>, #tpu.dimension_semantics<parallel>], iteration_bounds = array<i64: 2, 1>, scalar_prefetch = 0 : i64, scratch_operands = 0 : i64, tpu.core_type = #tpu.core_type<tc>, window_params = [{transform_indices = @transform_0, window_bounds = array<i64: 1, 16, 40>}, {pipeline_mode = #tpu.pipeline_mode<synchronous>, transform_indices = @transform_1, window_bounds = array<i64: 256, 40>}, {pipeline_mode = #tpu.pipeline_mode<synchronous>, transform_indices = @transform_2, window_bounds = array<i64: 256, 1>}, {pipeline_mode = #tpu.pipeline_mode<synchronous>, transform_indices = @transform_3, window_bounds = array<i64: 8, 256>}, {pipeline_mode = #tpu.pipeline_mode<synchronous>, transform_indices = @transform_4, window_bounds = array<i64: 8, 1>}, {transform_indices = @transform_5, window_bounds = array<i64: 1, 8, 16>}]} {
    %c0 = arith.constant 0 : index
    %c0_0 = arith.constant 0 : index
    %c0_1 = arith.constant 0 : index
    %0 = vector.load %arg2[%c0, %c0_0, %c0_1] : memref<1x16x40xf32, #tpu.memory_space<vmem>>, vector<1x16x40xf32>
    %1 = vector.shape_cast %0 : vector<1x16x40xf32> to vector<16x40xf32>
    %2 = arith.truncf %1 : vector<16x40xf32> to vector<16x40xbf16>
    %c0_2 = arith.constant 0 : index
    %c0_3 = arith.constant 0 : index
    %3 = vector.load %arg3[%c0_2, %c0_3] : memref<256x40xbf16, #tpu.memory_space<vmem>>, vector<256x40xbf16>
    %cst = arith.constant dense<0.000000e+00> : vector<256x16xf32>
    %4 = tpu.matmul %3, %2, %cst {dimension_numbers = #tpu.dot_dimension_numbers<[1], [1], [0], [0], [0, 0, 1, 0], [], []>} : vector<256x40xbf16>, vector<16x40xbf16>, vector<256x16xf32> -> vector<256x16xf32>
    %c0_4 = arith.constant 0 : index
    %c0_5 = arith.constant 0 : index
    %5 = vector.load %arg4[%c0_4, %c0_5] : memref<256x1xf32, #tpu.memory_space<vmem>>, vector<256x1xf32>
    %6 = vector.broadcast %5 : vector<256x1xf32> to vector<256x16xf32>
    %7 = arith.addf %4, %6 : vector<256x16xf32>
    %cst_6 = arith.constant 0.000000e+00 : f32
    %8 = vector.broadcast %cst_6 : f32 to vector<256x16xf32>
    %9 = arith.maximumf %7, %8 : vector<256x16xf32>
    %10 = arith.truncf %9 : vector<256x16xf32> to vector<256x16xbf16>
    %c0_7 = arith.constant 0 : index
    %c0_8 = arith.constant 0 : index
    %11 = vector.load %arg5[%c0_7, %c0_8] : memref<8x256xbf16, #tpu.memory_space<vmem>>, vector<8x256xbf16>
    %cst_9 = arith.constant dense<0.000000e+00> : vector<8x16xf32>
    %12 = tpu.matmul %11, %10, %cst_9 {dimension_numbers = #tpu.dot_dimension_numbers<[1], [0], [0], [1], [0, 0, 1, 1], [], []>} : vector<8x256xbf16>, vector<256x16xbf16>, vector<8x16xf32> -> vector<8x16xf32>
    %c0_10 = arith.constant 0 : index
    %c0_11 = arith.constant 0 : index
    %13 = vector.load %arg6[%c0_10, %c0_11] : memref<8x1xf32, #tpu.memory_space<vmem>>, vector<8x1xf32>
    %14 = vector.broadcast %13 : vector<8x1xf32> to vector<8x16xf32>
    %15 = arith.addf %12, %14 : vector<8x16xf32>
    %c0_12 = arith.constant 0 : index
    %c0_13 = arith.constant 0 : index
    %c0_14 = arith.constant 0 : index
    %16 = vector.load %arg7[%c0_12, %c0_13, %c0_14] : memref<1x8x16xf32, #tpu.memory_space<vmem>>, vector<1x8x16xf32>
    %17 = vector.shape_cast %16 : vector<1x8x16xf32> to vector<8x16xf32>
    %18 = vector.shape_cast %15 : vector<8x16xf32> to vector<1x8x16xf32>
    tpu.vector_store %arg7[%c0_12, %c0_13, %c0_14], %18 {strides = array<i32>} : memref<1x8x16xf32, #tpu.memory_space<vmem>>, vector<1x8x16xf32>,
    return
  }
  func.func @transform_0(%arg0: i32, %arg1: i32) -> (i32, i32, i32) {
    %c0_i32 = arith.constant 0 : i32
    %c0_i32_0 = arith.constant 0 : i32
    return %arg0, %arg1, %c0_i32 : i32, i32, i32
  }
  func.func @transform_1(%arg0: i32, %arg1: i32) -> (i32, i32) {
    %c0_i32 = arith.constant 0 : i32
    %c0_i32_0 = arith.constant 0 : i32
    %c0_i32_1 = arith.constant 0 : i32
    return %c0_i32, %c0_i32_0 : i32, i32
  }
  func.func @transform_2(%arg0: i32, %arg1: i32) -> (i32, i32) {
    %c0_i32 = arith.constant 0 : i32
    %c0_i32_0 = arith.constant 0 : i32
    %c0_i32_1 = arith.constant 0 : i32
    return %c0_i32, %c0_i32_0 : i32, i32
  }
  func.func @transform_3(%arg0: i32, %arg1: i32) -> (i32, i32) {
    %c0_i32 = arith.constant 0 : i32
    %c0_i32_0 = arith.constant 0 : i32
    %c0_i32_1 = arith.constant 0 : i32
    return %c0_i32, %c0_i32_0 : i32, i32
  }
  func.func @transform_4(%arg0: i32, %arg1: i32) -> (i32, i32) {
    %c0_i32 = arith.constant 0 : i32
    %c0_i32_0 = arith.constant 0 : i32
    %c0_i32_1 = arith.constant 0 : i32
    return %c0_i32, %c0_i32_0 : i32, i32
  }
  func.func @transform_5(%arg0: i32, %arg1: i32) -> (i32, i32, i32) {
    %c0_i32 = arith.constant 0 : i32
    %c0_i32_0 = arith.constant 0 : i32
    return %arg0, %c0_i32, %arg1 : i32, i32, i32
  }
}

</mosaic_0001>

<bundles_post_ra>
// kernel: tpu_custom_call.1
= control target key start
LH: loop header
LB: loop body
LE: loop exit
PB: predicated region body
PF: predicated region fallthrough
CT: control target
= control target key end

     0   :  { %10 = vsyncpa [#allocation3], 0  ;;  %s1634_s0 = inlined_call_operand.vmem [shape: f32[2,16,40], index: 0, kind: input, shape index: {}]   ;;  %s1635_s1 = inlined_call_operand.vmem [shape: bf16[256,40], index: 1, kind: input, shape index: {}]   ;;  %s1636_s2 = inlined_call_operand.vmem [shape: f32[256,1], index: 2, kind: input, shape index: {}]   ;;  %s1637_s3 = inlined_call_operand.vmem [shape: bf16[8,256], index: 3, kind: input, shape index: {}]   ;;  %s1638_s4 = inlined_call_operand.vmem [shape: f32[8,1], index: 4, kind: input, shape index: {}]   ;;  %s1639_s5 = inlined_call_operand.hbm [shape: f32[2,8,16], index: 5, kind: output, shape index: {}]  }
   0x1   :  { %12 = vsyncpa [#allocation3 + $0x1], 0  ;;  %s1276_s18 = smov 0   ;;  %s1278_s19 = smov 0  }
   0x2   :  { %s1280_s20 = smov 0   ;;  %s1282_s21 = smov 0  }
   0x3   :  { %s1284_s22 = smov 0   ;;  %s1286_s23 = smov 0  }
   0x4 LB: > { %s967_s24 = sadd.s32 4294967295, %s1242_s23   ;;  %s968_s25 = sadd.s32 4294967294, %s1242_s23   ;;  %s1242_s23 = sphi %s1286_s23, %s18_s23   ;;  %s1238_s22 = sphi %s1284_s22, %s1646_s22   ;;  %s1234_s21 = sphi %s1282_s21, %s1645_s21   ;;  %s1230_s20 = sphi %s1280_s20, %s1644_s20   ;;  %s1226_s19 = sphi %s1278_s19, %s1643_s19   ;;  %s1222_s18 = sphi %s1276_s18, %s1642_s18  }
   0x5   : > { %s30_s26 = sadd.s32 1, %s1238_s22  ;;  %s151_s27 = sadd.s32 1, %s1230_s20 }
   0x6   : > { %p32_p0 = scmp.ge.s32.totalorder %s30_s26, 2  ;;  %p161_p1 = scmp.ne.s32.totalorder %s1230_s20, %s1226_s19 }
   0x7   : > { %p162_p2 = scmp.eq.s32.totalorder %s967_s24, 1  ;;  %p167_p3 = scmp.ne.s32.totalorder %s1226_s19, %s1222_s18 }
   0x8   : > { %s1648_s26 = smov (%p32_p0, %s30_s26), 0  ;;  %p168_p5 = scmp.eq.s32.totalorder %s968_s25, 1 }
   0x9   : > { %p1316_p4 = por %p162_p2, %p161_p1  ;;  %s146_s29 = ssub.s32 %s1238_s22, %s1648_s26 }
   0xa   : > { %p971_p6 = scmp.ge.s32.totalorder %s1242_s23, 1  ;;  %p149_p7 = scmp.eq.s32.totalorder %s146_s29, 0 }
   0xb   : > { %p1323_p8 = por %p168_p5, %p167_p3  ;;  %p211_p9 = scmp.lt.s32.totalorder %s1242_s23, 3 }
   0xc   : > { %s1329_s6 = scalar_select %p149_p7, %s1230_s20, %s151_s27  }
   0xd   : > { %p212_p10 = pnand %p971_p6, %p211_p9 }
   0xe   : > { %p244_p11 = scmp.lt.s32.totalorder (!%p212_p10), %s1234_s21, 1  ;;  %v1146_v0 = vld [vmem:[%s1635_s1] sm:$0xff] (!%p212_p10)   ;;  %vm561_vm0 = vcmask (!%p212_p10), 326656   ;;  %v1244_v1 = vmov (!%p212_p10), 0   ;;  %v306_v8 = vld [vmem:[%s1636_s2 + $0x88] sm:$0xff] (!%p212_p10)  ;;  %v1148_v11 = vld [vmem:[%s1635_s1 + $0x10] sm:$0xff] (!%p212_p10)  }
   0xf   : > { %215 = sbr.rel (%p212_p10) target bundleno = 553 (0x229), region = 40  ;;  %1144 = vset.pattern.permute.xlu0 (!%p212_p10), %v1244_v1  ;;  %1145 = vset.pattern.permute.xlu1 (!%p212_p10), %v1244_v1  ;;  %v305_v5 = vld [vmem:[%s1636_s2 + $0x80] sm:$0xff] (!%p212_p10)  ;;  %v290_v9 = vld [vmem:[%s1636_s2 + $0x8] sm:$0xff] (!%p212_p10)  ;;  %v307_v12 = vld [vmem:[%s1636_s2 + $0x90] sm:$0xff] (!%p212_p10)  ;;  %s240_s7 = sand.u32 (!%p212_p10), 1, %s1226_s19   ;;  %vm876_vm1 = vcmask (!%p212_p10), 130048  }
  0x10   : > { %1055 = vmatprep.mubr.msk.bf16.mxu0 (!%p212_p10), %vm561_vm0, %v1146_v0  ;;  %403 = vperm.xlu0 (!%p212_p10), %1144, %v305_v5   ;;  %v289_v7 = vld [vmem:[%s1636_s2] sm:$0xff] (!%p212_p10)  ;;  %v1147_v10 = vld [vmem:[%s1635_s1 + $0x8] sm:$0xff] (!%p212_p10)   ;;  %v308_v13 = vld [vmem:[%s1636_s2 + $0x98] sm:$0xff] (!%p212_p10)  ;;  %s972_s8 = sshll.u32 (!%p212_p10), %s240_s7, 3  ;;  %s1245_s16 = smov (!%p212_p10), [#allocation2]  }
  0x11   : > { %323 = vperm.xlu1 (!%p212_p10), %1145, %v289_v7   ;;  %v291_v14 = vld [vmem:[%s1636_s2 + $0x10] sm:$0xff] (!%p212_p10)  ;;  %v292_v15 = vld [vmem:[%s1636_s2 + $0x18] sm:$0xff] (!%p212_p10)  ;;  %v1150_v17 = vld [vmem:[%s1635_s1 + $0x20] sm:$0xff] (!%p212_p10)   ;;  %s1168_s17 = sshll.u32 (!%p212_p10), %s1245_s16, 4  ;;  %s1169_s17 = int_to_ptr.vmem [resolvable:$false] %s1168_s17 }
  0x12   : > { %v1149_v16 = vld [vmem:[%s1635_s1 + $0x18] sm:$0xff] (!%p212_p10)   ;;  %v309_v18 = vld [vmem:[%s1636_s2 + $0xa0] sm:$0xff] (!%p212_p10)  ;;  %v310_v19 = vld [vmem:[%s1636_s2 + $0xa8] sm:$0xff] (!%p212_p10)  ;;  %s1170_s24 = scalar_lea.vmem (!%p212_p10), %s1169_s17, 256 }
  0x13   : > { %v293_v20 = vld [vmem:[%s1636_s2 + $0x20] sm:$0xff] (!%p212_p10)  ;;  %v294_v21 = vld [vmem:[%s1636_s2 + $0x28] sm:$0xff] (!%p212_p10)  ;;  %v1152_v23 = vld [vmem:[%s1635_s1 + $0x30] sm:$0xff] (!%p212_p10)  }
  0x14   : > { %408 = vperm.xlu0 (!%p212_p10), %1144, %v306_v8   ;;  %v1151_v22 = vld [vmem:[%s1635_s1 + $0x28] sm:$0xff] (!%p212_p10)   ;;  %v311_v24 = vld [vmem:[%s1636_s2 + $0xb0] sm:$0xff] (!%p212_p10)  ;;  %v312_v25 = vld [vmem:[%s1636_s2 + $0xb8] sm:$0xff] (!%p212_p10) }
  0x15   : > { %328 = vperm.xlu1 (!%p212_p10), %1145, %v290_v9   ;;  %v295_v26 = vld [vmem:[%s1636_s2 + $0x30] sm:$0xff] (!%p212_p10)  ;;  %v296_v27 = vld [vmem:[%s1636_s2 + $0x38] sm:$0xff] (!%p212_p10)  ;;  %v1154_v29 = vld [vmem:[%s1635_s1 + $0x40] sm:$0xff] (!%p212_p10)  }
  0x16   : > { %s245_s9 = scalar_select %p244_p11, %s1234_s21, 1  ;;  %v1153_v28 = vld [vmem:[%s1635_s1 + $0x38] sm:$0xff]   ;;  %v313_v30 = vld [vmem:[%s1636_s2 + $0xc0] sm:$0xff]  ;;  %v314_v31 = vld [vmem:[%s1636_s2 + $0xc8] sm:$0xff] }
  0x17   : > { %v297_v32 = vld [vmem:[%s1636_s2 + $0x40] sm:$0xff]  ;;  %v298_v33 = vld [vmem:[%s1636_s2 + $0x48] sm:$0xff]  ;;  %v1156_v35 = vld [vmem:[%s1635_s1 + $0x50] sm:$0xff]  }
  0x18   : > { %s1013_s10 = sshll.u32 %s245_s9, 4  ;;  %413 = vperm.xlu0 %1144, %v307_v12   ;;  %v1155_v34 = vld [vmem:[%s1635_s1 + $0x48] sm:$0xff]   ;;  %v315_v36 = vld [vmem:[%s1636_s2 + $0xd0] sm:$0xff]  ;;  %v316_v37 = vld [vmem:[%s1636_s2 + $0xd8] sm:$0xff]  ;;  %s1010_s9 = sshll.u32 %s1234_s21, 7 }
  0x19   : > { %s251_s13 = scalar_lea.vmem %s1634_s0, %s1013_s10  ;;  %418 = vperm.xlu1 %1145, %v308_v13   ;;  %v299_v38 = vld [vmem:[%s1636_s2 + $0x50] sm:$0xff]  ;;  %v300_v39 = vld [vmem:[%s1636_s2 + $0x58] sm:$0xff]  ;;  %v1158_v41 = vld [vmem:[%s1635_s1 + $0x60] sm:$0xff]   ;;  %s242_s10 = scalar_lea.vmem [#allocation2], %s972_s8 }
  0x1a   : > { %v254_v2 = vld [vmem:[%s251_s13] sm:$0xff]  ;;  %v255_v3 = vld [vmem:[%s251_s13 + $0x8] sm:$0xff]  ;;  %v1157_v40 = vld [vmem:[%s1635_s1 + $0x58] sm:$0xff]   ;;  %s893_s11 = sshll.u32 %s242_s10, 4  ;;  %s1587_s14 = scalar_lea.hbm %s1639_s5, %s1010_s9  ;;  %s1589_s11 = int_to_ptr.vmem [resolvable:$true] %s893_s11 }
  0x1b   : > { %v256_v4 = vpack.c.bf16 %v255_v3, %v254_v2  ;;  %v317_v42 = vld [vmem:[%s1636_s2 + $0xe0] sm:$0xff]  ;;  %v318_v43 = vld [vmem:[%s1636_s2 + $0xe8] sm:$0xff]  ;;  %v1160_v47 = vld [vmem:[%s1635_s1 + $0x70] sm:$0xff]   ;;  %s879_s21 = scalar_lea.sflag [#allocation3], %s240_s7  ;;  %s1164_s15 = scalar_lea.vmem %s1589_s11, 128 }
  0x1c   : > { %333 = vperm.xlu0 %1144, %v291_v14   ;;  %v301_v44 = vld [vmem:[%s1636_s2 + $0x60] sm:$0xff]  ;;  %v302_v45 = vld [vmem:[%s1636_s2 + $0x68] sm:$0xff]  ;;  %v319_v48 = vld [vmem:[%s1636_s2 + $0xf0] sm:$0xff]  ;;  %p1165_p12 = scmp.ne.s32.totalorder %s1589_s11, %s1164_s15  ;;  %p1171_p1 = scmp.lt.s32.totalorder %s1589_s11, %s1169_s17 }
  0x1d   : > { %1087 = vmatprep.subr.msk.bf16.mxu0 %vm561_vm0, %v256_v4  ;;  %v611_v6 = vsel %vm561_vm0, %v256_v4, 0  ;;  %338 = vperm.xlu1 %1145, %v292_v15   ;;  %v1159_v46 = vld [vmem:[%s1635_s1 + $0x68] sm:$0xff]   ;;  %v320_v49 = vld [vmem:[%s1636_s2 + $0xf8] sm:$0xff]  ;;  %v303_v50 = vld [vmem:[%s1636_s2 + $0x70] sm:$0xff]  ;;  %p1172_p2 = scmp.lt.s32.totalorder %s1170_s24, %s1164_s15 }
  0x1e   : > { %1054 = vmatpush3.bf16.xpose.msra.mxu0 %v611_v6  ;;  %v304_v51 = vld [vmem:[%s1636_s2 + $0x78] sm:$0xff]  ;;  %v823_v53 = vld [vmem:[%s1638_s4] sm:$0xff]  ;;  %p1166_p13 = pnand %p1165_p12, %p1316_p4 }
  0x1f   : > { %v1161_v52 = vld [vmem:[%s1635_s1 + $0x78] sm:$0xff]   ;;  %v1508_v58 = vld [vmem:[%s1637_s3] sm:$0xff]  ;;  %p1173_p3 = por %p1172_p2, %p1171_p1 }
  0x20   : > { %423 = vperm.xlu0 %1144, %v309_v18   ;;  %v1008_v59 = vcombine.high %v1508_v58, %v1508_v58  ;;  %p1167_p0 = pneg %p1166_p13 }
  0x21   : > { %428 = vperm.xlu1 %1145, %v310_v19  }
  0x22   : > { %868 = vmatprep.mubr.bf16.mxu1 %v1008_v59  ;;  %p1174_p5 = pnand %p1173_p3, %p1167_p0 }
  0x24   : > { %343 = vperm.xlu0 %1144, %v293_v20  }
  0x25   : > { %1056 = vmatmul.mubr.msk.bf16.vlgmr.msra.gmra.mrb[0].mxu0 %vm561_vm0, %v1147_v10  ;;  %348 = vperm.xlu1 %1145, %v294_v21  }
  0x26   : > { %1059 = vmatprep.mubr.msk.bf16.mxu0 %vm561_vm0, %v1148_v11 }
  0x28   : > { %433 = vperm.xlu0 %1144, %v311_v24  }
  0x29   : > { %438 = vperm.xlu1 %1145, %v312_v25  }
  0x2c   : > { %353 = vperm.xlu0 %1144, %v295_v26  }
  0x2d   : > { %1060 = vmatmul.mubr.msk.bf16.gmra.mrb[4].mxu0 %vm561_vm0, %v1149_v16  ;;  %358 = vperm.xlu1 %1145, %v296_v27  }
  0x2e   : > { %1063 = vmatprep.mubr.msk.bf16.mxu0 %vm561_vm0, %v1150_v17 }
  0x30   : > { %443 = vperm.xlu0 %1144, %v313_v30  }
  0x31   : > { %448 = vperm.xlu1 %1145, %v314_v31  }
  0x34   : > { %363 = vperm.xlu0 %1144, %v297_v32  }
  0x35   : > { %1064 = vmatmul.mubr.msk.bf16.gmra.mrb[8].mxu0 %vm561_vm0, %v1151_v22  ;;  %368 = vperm.xlu1 %1145, %v298_v33  }
  0x36   : > { %1067 = vmatprep.mubr.msk.bf16.mxu0 %vm561_vm0, %v1152_v23 }
  0x38   : > { %453 = vperm.xlu0 %1144, %v315_v36  }
  0x39   : > { %458 = vperm.xlu1 %1145, %v316_v37  }
  0x3c   : > { %373 = vperm.xlu0 %1144, %v299_v38  }
  0x3d   : > { %1068 = vmatmul.mubr.msk.bf16.gmra.mrb[12].mxu0 %vm561_vm0, %v1153_v28  ;;  %378 = vperm.xlu1 %1145, %v300_v39  }
  0x3e   : > { %1071 = vmatprep.mubr.msk.bf16.mxu0 %vm561_vm0, %v1154_v29 }
  0x40   : > { %463 = vperm.xlu0 %1144, %v317_v42  }
  0x41   : > { %468 = vperm.xlu1 %1145, %v318_v43  }
  0x44   : > { %383 = vperm.xlu0 %1144, %v301_v44  }
  0x45   : > { %1072 = vmatmul.mubr.msk.bf16.gmra.mrb[16].mxu0 %vm561_vm0, %v1155_v34  ;;  %388 = vperm.xlu1 %1145, %v302_v45  }
  0x46   : > { %1075 = vmatprep.mubr.msk.bf16.mxu0 %vm561_vm0, %v1156_v35 }
  0x48   : > { %473 = vperm.xlu0 %1144, %v319_v48  }
  0x49   : > { %478 = vperm.xlu1 %1145, %v320_v49  }
  0x4c   : > { %393 = vperm.xlu0 %1144, %v303_v50  }
  0x4d   : > { %1076 = vmatmul.mubr.msk.bf16.gmra.mrb[20].mxu0 %vm561_vm0, %v1157_v40  ;;  %398 = vperm.xlu1 %1145, %v304_v51  }
  0x4e   : > { %1079 = vmatprep.mubr.msk.bf16.mxu0 %vm561_vm0, %v1158_v41 }
  0x50   : > { %826 = vperm.xlu0 %1144, %v823_v53  }
  0x55   : > { %1080 = vmatmul.mubr.msk.bf16.gmra.mrb[24].mxu0 %vm561_vm0, %v1159_v46 }
  0x56   : > { %1083 = vmatprep.mubr.msk.bf16.mxu0 %vm561_vm0, %v1160_v47 }
  0x5d   : > { %1084 = vmatmul.mubr.msk.bf16.gmra.mrb[28].mxu0 %vm561_vm0, %v1161_v52 }
  0x8f   : > { %v1501_v54 = vpop.permute.xlu0 %403 }
  0x90   : > { %v324_v55 = vpop.permute.xlu1 %323 }
  0x93   : > { %v1503_v56 = vpop.permute.xlu0 %408 }
  0x94   : > { %v329_v57 = vpop.permute.xlu1 %328 }
  0x97   : > { %v1512_v60 = vpop.permute.xlu0 %413 }
  0x98   : > { %v1514_v61 = vpop.permute.xlu1 %418 }
  0x9b   : > { %v334_v62 = vpop.permute.xlu0 %333 }
  0x9c   : > { %v339_v63 = vpop.permute.xlu1 %338 }
  0x9f   : > { %v1516_v0 = vpop.permute.xlu0 %423 }
  0xa0   : > { %v1518_v1 = vpop.permute.xlu1 %428 }
  0xa3   : > { %v344_v2 = vpop.permute.xlu0 %343 }
  0xa4   : > { %v349_v3 = vpop.permute.xlu1 %348 }
  0xa7   : > { %v1520_v4 = vpop.permute.xlu0 %433 }
  0xa8   : > { %v1522_v5 = vpop.permute.xlu1 %438 }
  0xab   : > { %v354_v6 = vpop.permute.xlu0 %353 }
  0xac   : > { %v359_v7 = vpop.permute.xlu1 %358 }
  0xaf   : > { %v1524_v8 = vpop.permute.xlu0 %443 }
  0xb0   : > { %v1526_v9 = vpop.permute.xlu1 %448 }
  0xb3   : > { %v364_v10 = vpop.permute.xlu0 %363 }
  0xb4   : > { %v369_v11 = vpop.permute.xlu1 %368 }
  0xb7   : > { %v1528_v12 = vpop.permute.xlu0 %453 }
  0xb8   : > { %v1530_v13 = vpop.permute.xlu1 %458 }
  0xbb   : > { %v374_v14 = vpop.permute.xlu0 %373 }
  0xbc   : > { %v379_v18 = vpop.permute.xlu1 %378 }
  0xbf   : > { %v1532_v26 = vpop.permute.xlu0 %463 }
  0xc0   : > { %v1536_v30 = vpop.permute.xlu1 %468 }
  0xc3   : > { %v384_v39 = vpop.permute.xlu0 %383 }
  0xc4   : > { %v389_v43 = vpop.permute.xlu1 %388 }
  0xc7   : > { %v1544_v51 = vpop.permute.xlu0 %473 }
  0xc8   : > { %v1546_v59 = vpop.permute.xlu1 %478 }
  0xf8   : > { %v1057_v15 = vpop.f32.mrb[0].mxu0 }
  0xf9   : > { %v656_v16 = vadd.f32 %v1057_v15, %v334_v62  ;;  %v647_v17 = vpop.f32.mrb[1].mxu0  ;;  %v394_v15 = vpop.permute.xlu0 %393 }
  0xfa   : > { %v648_v19 = vadd.f32 %v647_v17, %v324_v55  ;;  %v1058_v20 = vpop.f32.mrb[2].mxu0 }
  0xfb   : > { %v659_v21 = vadd.f32 %v1058_v20, %v339_v63  ;;  %v650_v22 = vpop.f32.mrb[3].mxu0  ;;  %v776_v24 = vmax.f32 %v656_v16, 0.0  ;;  %v399_v20 = vpop.permute.xlu1 %398 }
  0xfc   : > { %v651_v23 = vadd.f32 %v650_v22, %v329_v57  ;;  %v774_v27 = vmax.f32 %v648_v19, 0.0 }
  0xfd   : > { %v777_v25 = vmax.f32 %v659_v21, 0.0 }
  0xfe   : > { %v775_v28 = vmax.f32 %v651_v23, 0.0 }
  0xff   : > { %v1534_v29 = vpack.c.bf16 %v777_v25, %v776_v24 }
 0x100   : > { %v1061_v31 = vpop.f32.mrb[4].mxu0  ;;  %v1538_v32 = vpack.c.bf16 %v775_v28, %v774_v27 }
 0x101   : > { %v672_v33 = vadd.f32 %v1061_v31, %v354_v6  ;;  %v663_v34 = vpop.f32.mrb[5].mxu0 }
 0x102   : > { %v664_v35 = vadd.f32 %v663_v34, %v344_v2  ;;  %v1062_v36 = vpop.f32.mrb[6].mxu0 }
 0x103   : > { %v675_v37 = vadd.f32 %v1062_v36, %v359_v7  ;;  %v666_v38 = vpop.f32.mrb[7].mxu0  ;;  %v780_v41 = vmax.f32 %v672_v33, 0.0 }
 0x104   : > { %v667_v40 = vadd.f32 %v666_v38, %v349_v3  ;;  %v778_v44 = vmax.f32 %v664_v35, 0.0 }
 0x105   : > { %v781_v42 = vmax.f32 %v675_v37, 0.0 }
 0x106   : > { %v779_v45 = vmax.f32 %v667_v40, 0.0 }
 0x107   : > { %v1540_v46 = vpack.c.bf16 %v781_v42, %v780_v41 }
 0x108   : > { %v1542_v47 = vpack.c.bf16 %v779_v45, %v778_v44  ;;  %v1065_v48 = vpop.f32.mrb[8].mxu0 }
 0x109   : > { %v688_v49 = vadd.f32 %v1065_v48, %v374_v14  ;;  %v679_v50 = vpop.f32.mrb[9].mxu0 }
 0x10a   : > { %v680_v52 = vadd.f32 %v679_v50, %v364_v10  ;;  %v1066_v53 = vpop.f32.mrb[10].mxu0 }
 0x10b   : > { %v691_v55 = vadd.f32 %v1066_v53, %v379_v18  ;;  %v682_v57 = vpop.f32.mrb[11].mxu0  ;;  %v784_v63 = vmax.f32 %v688_v49, 0.0 }
 0x10c   : > { %v683_v62 = vadd.f32 %v682_v57, %v369_v11  ;;  %v782_v3 = vmax.f32 %v680_v52, 0.0 }
 0x10d   : > { %v785_v2 = vmax.f32 %v691_v55, 0.0 }
 0x10e   : > { %v783_v6 = vmax.f32 %v683_v62, 0.0 }
 0x10f   : > { %v1548_v7 = vpack.c.bf16 %v785_v2, %v784_v63 }
 0x110   : > { %v1550_v16 = vpack.c.bf16 %v783_v6, %v782_v3  ;;  %v1069_v14 = vpop.f32.mrb[12].mxu0 }
 0x111   : > { %v704_v17 = vadd.f32 %v1069_v14, %v394_v15  ;;  %v695_v19 = vpop.f32.mrb[13].mxu0 }
 0x112   : > { %v696_v10 = vadd.f32 %v695_v19, %v384_v39  ;;  %v1070_v21 = vpop.f32.mrb[14].mxu0 }
 0x113   : > { %v707_v18 = vadd.f32 %v1070_v21, %v399_v20  ;;  %v698_v22 = vpop.f32.mrb[15].mxu0  ;;  %v788_v24 = vmax.f32 %v704_v17, 0.0 }
 0x114   : > { %v699_v23 = vadd.f32 %v698_v22, %v389_v43  ;;  %v786_v25 = vmax.f32 %v696_v10, 0.0 }
 0x115   : > { %v789_v11 = vmax.f32 %v707_v18, 0.0 }
 0x116   : > { %v787_v27 = vmax.f32 %v699_v23, 0.0 }
 0x117   : > { %v1552_v28 = vpack.c.bf16 %v789_v11, %v788_v24 }
 0x118   : > { %v1554_v31 = vpack.c.bf16 %v787_v27, %v786_v25  ;;  %v1073_v33 = vpop.f32.mrb[16].mxu0 }
 0x119   : > { %v720_v34 = vadd.f32 %v1073_v33, %v1512_v60  ;;  %v711_v35 = vpop.f32.mrb[17].mxu0  ;;  %v827_v33 = vpop.permute.xlu0 %826 }
 0x11a   : > { %v712_v36 = vadd.f32 %v711_v35, %v1501_v54  ;;  %v1074_v37 = vpop.f32.mrb[18].mxu0 }
 0x11b   : > { %v723_v38 = vadd.f32 %v1074_v37, %v1514_v61  ;;  %v714_v39 = vpop.f32.mrb[19].mxu0  ;;  %v792_v41 = vmax.f32 %v720_v34, 0.0 }
 0x11c   : > { %v715_v40 = vadd.f32 %v714_v39, %v1503_v56  ;;  %v790_v43 = vmax.f32 %v712_v36, 0.0 }
 0x11d   : > { %v793_v42 = vmax.f32 %v723_v38, 0.0 }
 0x11e   : > { %v791_v44 = vmax.f32 %v715_v40, 0.0 }
 0x11f   : > { %v815_v45 = vpack.c.bf16 %v793_v42, %v792_v41 }
 0x120   : > { %v1077_v48 = vpop.f32.mrb[20].mxu0  ;;  %v814_v49 = vpack.c.bf16 %v791_v44, %v790_v43 }
 0x121   : > { %v736_v50 = vadd.f32 %v1077_v48, %v1520_v4  ;;  %v727_v52 = vpop.f32.mrb[21].mxu0 }
 0x122   : > { %v728_v60 = vadd.f32 %v727_v52, %v1516_v0  ;;  %v1078_v53 = vpop.f32.mrb[22].mxu0  ;;  %1031 = vmatprep.subr.bf16.mxu1 %v814_v49 }
 0x123   : > { %v739_v54 = vadd.f32 %v1078_v53, %v1522_v5  ;;  %v730_v61 = vpop.f32.mrb[23].mxu0  ;;  %1032 = vmatpush3.bf16.msra.mxu1 %v1538_v32  ;;  %v796_v55 = vmax.f32 %v736_v50, 0.0 }
 0x124   : > { %v731_v56 = vadd.f32 %v730_v61, %v1518_v1  ;;  %1033 = vmatprep.subr.bf16.mxu1 %v815_v45  ;;  %v794_v62 = vmax.f32 %v728_v60, 0.0 }
 0x125   : > { %v797_v57 = vmax.f32 %v739_v54, 0.0 }
 0x126   : > { %v795_v63 = vmax.f32 %v731_v56, 0.0 }
 0x127   : > { %v817_v2 = vpack.c.bf16 %v797_v57, %v796_v55  ;;  %1034 = vmatpush3.bf16.msra.mxu1 %v1534_v29 }
 0x128   : > { %v816_v4 = vpack.c.bf16 %v795_v63, %v794_v62  ;;  %v1081_v3 = vpop.f32.mrb[24].mxu0 }
 0x129   : > { %v752_v0 = vadd.f32 %v1081_v3, %v1528_v12  ;;  %v743_v6 = vpop.f32.mrb[25].mxu0 }
 0x12a   : > { %v744_v5 = vadd.f32 %v743_v6, %v1524_v8  ;;  %v1082_v15 = vpop.f32.mrb[26].mxu0  ;;  %1035 = vmatprep.subr.bf16.mxu1 %v816_v4 }
 0x12b   : > { %v755_v32 = vadd.f32 %v1082_v15, %v1530_v13  ;;  %v746_v1 = vpop.f32.mrb[27].mxu0  ;;  %1036 = vmatpush3.bf16.msra.mxu1 %v1542_v47  ;;  %v800_v17 = vmax.f32 %v752_v0, 0.0 }
 0x12c   : > { %v747_v14 = vadd.f32 %v746_v1, %v1526_v9  ;;  %1037 = vmatprep.subr.bf16.mxu1 %v817_v2  ;;  %v798_v29 = vmax.f32 %v744_v5, 0.0 }
 0x12d   : > { %v801_v19 = vmax.f32 %v755_v32, 0.0 }
 0x12e   : > { %v799_v20 = vmax.f32 %v747_v14, 0.0 }
 0x12f   : > { %v819_v10 = vpack.c.bf16 %v801_v19, %v800_v17  ;;  %1038 = vmatpush3.bf16.msra.mxu1 %v1540_v46 }
 0x130   : > { %v818_v12 = vpack.c.bf16 %v799_v20, %v798_v29  ;;  %v1085_v21 = vpop.f32.mrb[28].mxu0 }
 0x131   : > { %v768_v8 = vadd.f32 %v1085_v21, %v1544_v51  ;;  %v759_v18 = vpop.f32.mrb[29].mxu0 }
 0x132   : > { %v760_v13 = vadd.f32 %v759_v18, %v1532_v26  ;;  %v1086_v22 = vpop.f32.mrb[30].mxu0  ;;  %1039 = vmatprep.subr.bf16.mxu1 %v818_v12 }
 0x133   : > { %v771_v47 = vadd.f32 %v1086_v22, %v1546_v59  ;;  %v762_v9 = vpop.f32.mrb[31].mxu0  ;;  %1040 = vmatpush3.bf16.msra.mxu1 %v1550_v16  ;;  %v804_v24 = vmax.f32 %v768_v8, 0.0  ;;  %v1007_v59 = vcombine.low %v1508_v58, %v1508_v58 }
 0x134   : > { %v763_v23 = vadd.f32 %v762_v9, %v1536_v30  ;;  %1041 = vmatprep.subr.bf16.mxu1 %v819_v10  ;;  %v802_v11 = vmax.f32 %v760_v13, 0.0 }
 0x135   : > { %v805_v46 = vmax.f32 %v771_v47, 0.0 }
 0x136   : > { %v803_v25 = vmax.f32 %v763_v23, 0.0 }
 0x137   : > { %v821_v51 = vpack.c.bf16 %v805_v46, %v804_v24  ;;  %1042 = vmatpush3.bf16.msra.mxu1 %v1548_v7 }
 0x138   : > { %v820_v26 = vpack.c.bf16 %v803_v25, %v802_v11 }
 0x13a   : > { %1043 = vmatprep.subr.bf16.mxu1 %v820_v26 }
 0x13b   : > { %1044 = vmatpush3.bf16.msra.mxu1 %v1554_v31 }
 0x13c   : > { %1045 = vmatprep.subr.bf16.mxu1 %v821_v51 }
 0x13f   : > { %1046 = vmatpush3.bf16.msra.mxu1 %v1552_v28 }
 0x142   : > { %869 = vmatmul.mubr.bf16.vlgmr.msra.gmra.mrb[0].mxu1 %v1007_v59 }
 0x215   : > { %v1047_v30 = vpop.f32.mrb[0].mxu1 }
 0x216   : > { %v1048_v16 = vpop.f32.mrb[1].mxu1 }
 0x217   : > { %v1049_v7 = vadd.f32 %v1048_v16, %v1047_v30  ;;  %v1050_v27 = vpop.f32.mrb[2].mxu1 }
 0x218   : > { %v1051_v34 = vpop.f32.mrb[3].mxu1 }
 0x219   : > { %v871_v31 = vadd.f32 %v1049_v7, %v827_v33 }
 0x21b   : > { %877 = vst.msk [vmem:[%s242_s10] sm:$0xff] %vm876_vm1, %v871_v31 }
 0x21c   : > { %1177 = shalt.err (!%p1174_p5)
}
 0x21d   : > { %s1178_s25 = scalar_lea.hbm %s1587_s14, 128  ;;  %s1182_s7 = scalar_lea.hbm %s1639_s5, 256 }
 0x21e   : > { %p1179_p6 = scmp.ne.s32.totalorder %s1587_s14, %s1178_s25  ;;  %p1183_p10 = scmp.lt.u32.totalorder %s1587_s14, %s1639_s5 }
 0x21f   : > { %p1184_p11 = scmp.lt.u32.totalorder %s1182_s7, %s1178_s25  ;;  %p1186_p13 = scmp.lt.u32.totalorder %s1178_s25, %s1587_s14 }
 0x220   : > { %p1180_p7 = pnand %p1179_p6, %p1316_p4 }
 0x221   : > { %p1185_p12 = por %p1184_p11, %p1183_p10 }
 0x222   : > { %p1181_p9 = pneg %p1180_p7 }
 0x223   : > { %p1187_p0 = por %p1186_p13, %p1185_p12 }
 0x225   : > { %p1188_p1 = pnand %p1187_p0, %p1181_p9 }
 0x227   : > { %1191 = shalt.err (!%p1188_p1)
}
 0x228   : > { %1088 = dma.vmem_to_hbm [thread:$0]  (%p1316_p4), %s1589_s11, 128, %s1587_s14, %s879_s21  }
 0x229 PF: > { %p1094_p2 = scmp.ge.s32.totalorder %s1242_s23, 2  ;;  %s905_s10 = sand.u32 1, %s1222_s18  }
 0x22a   : > { %s906_s12 = scalar_lea.sflag [#allocation3], %s905_s10 }
 0x22b   : > { %p1091_p3 = pnand %p1094_p2, %p1323_p8 }
 0x22d   : > { %1217 = dma.done.wait (!%p1091_p3), %s906_s12, 128  }
 0x22e   : > { %1219 = vsyncadd (!%p1091_p3), %s906_s12, 4294967168  ;;  %s18_s23 = sadd.s32 1, %s1242_s23   ;;  %s1642_s18 = smov %s1226_s19 }
 0x22f   : > { %p15_p5 = scmp.ge.s32.totalorder %s18_s23, 4   ;;  %s1643_s19 = smov %s1230_s20 }
 0x230   : > { %s1644_s20 = smov %s1329_s6  ;;  %s1645_s21 = smov %s1238_s22 }
 0x231   : > { %s1646_s22 = smov %s1648_s26  ;;  %17 = sbr.rel (!%p15_p5) target bundleno = 4 (0x4), region = 75 }
 0x238   :  { %911 = vsyncpa [#allocation3], 1 }
 0x239   :  { %913 = vsyncpa [#allocation3 + $0x1], 1 }

</bundles_post_ra>
